<compile_context>
chip_gen: v7x
topology: tpu7x:2x2x1
jax: 0.10.0
libtpu: 0.0.40
codegen_flags: <defaults>
</compile_context>

<pallas_src>
import jax
import jax.numpy as jnp
from jax.experimental import pallas as pl
from jax.experimental.pallas import tpu as pltpu


# ~2 MiB per buffer -> 2 arrays x 2 pipeline buffers = 8 MiB VMEM, safely under
# the scoped defaults on v5e (16 MiB), v6e (32 MiB) and v7x (32 MiB of 64 MiB).
_TARGET_TILE_BYTES = 2 * 1024 * 1024
_LANE_CANDIDATES = (4096, 2048, 1024, 512, 256, 128)


def _copy_kernel(x_ref, o_ref):
    # Identity copy of one (tile_r, lanes) lane-dense tile.
    o_ref[...] = x_ref[...]


def _pick_slab(total: int):
    """Pick a lane-dense (rows, lanes) factorization of `total`.

    Prefers the widest lane count (multiple of 128) that still leaves >= 8
    sublane rows; falls back to any 128-multiple that divides `total`.
    Returns None if `total` is not a multiple of 128.
    """
    best = None
    for k in _LANE_CANDIDATES:
        if total % k == 0:
            if best is None:
                best = k
            if total // k >= 8:
                return total // k, k
    if best is None:
        return None
    return total // best, best


def _pick_row_tile(rows: int, lanes: int, itemsize: int) -> int:
    """Rows per block: multiple of 8 (or the full extent), ~2 MiB per buffer."""
    max_rows = max(8, _TARGET_TILE_BYTES // (lanes * itemsize))
    max_rows = (max_rows // 8) * 8
    if rows <= max_rows:
        return rows          # full extent along sublanes -> always a legal block
    return max_rows          # multiple of 8; remainder block handled by Pallas


@jax.jit
def flatten(x: jax.Array) -> jax.Array:
    """Equivalent of torch `x.view(x.size(0), -1)` for an N-D (e.g. NCHW) input."""
    n = x.shape[0]
    feat = 1
    for d in x.shape[1:]:
        feat *= d
    total = n * feat
    itemsize = jnp.dtype(x.dtype).itemsize

    slab = _pick_slab(total)
    if total == 0 or slab is None:
        # Odd-sized tail (not a multiple of 128 lanes) or empty tensor:
        # flatten is pure metadata in XLA, so no kernel is needed.
        return x.reshape(n, feat)

    rows, lanes = slab
    tile_r = _pick_row_tile(rows, lanes, itemsize)

    # One lane-dense slab covering the whole tensor; decouples tile shape from
    # both N and C*H*W and guarantees (8, 128)-aligned, unmasked stores.
    x_slab = x.reshape(rows, lanes)

    y_slab = pl.pallas_call(
        _copy_kernel,
        out_shape=jax.ShapeDtypeStruct((rows, lanes), x.dtype),
        grid_spec=pltpu.PrefetchScalarGridSpec(
            num_scalar_prefetch=0,
            grid=(pl.cdiv(rows, tile_r),),
            in_specs=[pl.BlockSpec((tile_r, lanes), lambda i: (i, 0))],
            out_specs=pl.BlockSpec((tile_r, lanes), lambda i: (i, 0)),
        ),
        # Pure data movement: donate the (intermediate) input buffer as the
        # output so the copy is elided / near-free when the buffer is dead.
        input_output_aliases={0: 0},
        cost_estimate=pl.CostEstimate(
            flops=0, transcendentals=0, bytes_accessed=2 * total * itemsize
        ),
        compiler_params=pltpu.CompilerParams(
            dimension_semantics=("parallel",),
        ),
    )(x_slab)

    # Metadata-only reshape back to torch's (N, C*H*W) view.
    return y_slab.reshape(n, feat)


if __name__ == "__main__":
    key = jax.random.PRNGKey(0)
    # Small NCHW input consistent with a conv-net feature map: (2, 4, 16, 16)
    x = jax.random.normal(key, (2, 4, 16, 16), dtype=jnp.float32)

    y = flatten(x)
    y = jax.block_until_ready(y)

    # Correctness check against plain JAX reshape (== torch .view semantics).
    ref = x.reshape(x.shape[0], -1)
    assert y.shape == (2, 4 * 16 * 16), y.shape
    assert y.dtype == x.dtype
    assert jnp.array_equal(y, ref)

    print("KERNEL_OK")
</pallas_src>

<mosaic_0001>
module attributes {stable_mosaic.version = 11 : i64} {
  func.func @_copy_kernel(%arg0: i32, %arg1: memref<8x256xf32, #tpu.memory_space<vmem>>, %arg2: memref<8x256xf32, #tpu.memory_space<vmem>>) attributes {dimension_semantics = [#tpu.dimension_semantics<parallel>], iteration_bounds = array<i64: 1>, scalar_prefetch = 0 : i64, scratch_operands = 0 : i64, tpu.core_type = #tpu.core_type<tc>, window_params = [{transform_indices = @transform_0, window_bounds = array<i64: 8, 256>}, {transform_indices = @transform_1, window_bounds = array<i64: 8, 256>}]} {
    %c0 = arith.constant 0 : index
    %c0_0 = arith.constant 0 : index
    %0 = vector.load %arg1[%c0, %c0_0] : memref<8x256xf32, #tpu.memory_space<vmem>>, vector<8x256xf32>
    %c0_1 = arith.constant 0 : index
    %c0_2 = arith.constant 0 : index
    %1 = vector.load %arg2[%c0_1, %c0_2] : memref<8x256xf32, #tpu.memory_space<vmem>>, vector<8x256xf32>
    tpu.vector_store %arg2[%c0_1, %c0_2], %0 {strides = array<i32>} : memref<8x256xf32, #tpu.memory_space<vmem>>, vector<8x256xf32>,
    return
  }
  func.func @transform_0(%arg0: i32) -> (i32, i32) {
    %c0_i32 = arith.constant 0 : i32
    %c0_i32_0 = arith.constant 0 : i32
    return %arg0, %c0_i32 : i32, i32
  }
  func.func @transform_1(%arg0: i32) -> (i32, i32) {
    %c0_i32 = arith.constant 0 : i32
    %c0_i32_0 = arith.constant 0 : i32
    return %arg0, %c0_i32 : i32, i32
  }
}

</mosaic_0001>

<bundles_post_ra>
// kernel: flatten.1
= control target key start
LH: loop header
LB: loop body
LE: loop exit
PB: predicated region body
PF: predicated region fallthrough
CT: control target
= control target key end

     0   :  { %s38_s0 = inlined_call_operand.vmem [shape: f32[8,256], index: 0, kind: input, shape index: {}, may-alias: {0,1}]   ;;  %s39_s1 = inlined_call_operand.vmem [shape: f32[8,256], index: 1, kind: output, shape index: {}, may-alias: {0,1}]  }
   0x1   :  { %v8_v0 = vld [vmem:[%s38_s0] sm:$0xff]  ;;  %v9_v1 = vld [vmem:[%s38_s0 + $0x8] sm:$0xff] }
   0x2   :  { %10 = vst [vmem:[%s39_s1] sm:$0xff] %v8_v0  ;;  %11 = vst [vmem:[%s39_s1 + $0x8] sm:$0xff] %v9_v1 }

</bundles_post_ra>
